<compile_context>
chip_gen: v6e
topology: v6e:2x2x1
jax: 0.10.0
libtpu: 0.0.40
codegen_flags: <defaults>
</compile_context>

<pallas_src>
import math

import jax
import jax.numpy as jnp
from jax import lax
from jax.experimental import pallas as pl
from jax.experimental.pallas import tpu as pltpu

_TWO_PI = 2.0 * math.pi
_HALF_PI = 0.5 * math.pi
_INV_SQRT2 = 1.0 / math.sqrt(2.0)
_SQRT_2_OVER_PI = math.sqrt(2.0 / math.pi)
_LANES = 128


# ---------------------------------------------------------------------------
# GELU variants
# ---------------------------------------------------------------------------
def _gelu_erf(h):
    # Exact GELU — matches PyTorch nn.GELU() default.
    return 0.5 * h * (1.0 + lax.erf(h * _INV_SQRT2))


def _gelu_tanh(h):
    return 0.5 * h * (1.0 + jnp.tanh(_SQRT_2_OVER_PI * (h + 0.044715 * h * h * h)))


_GELU = {"erf": _gelu_erf, "tanh": _gelu_tanh}


# ---------------------------------------------------------------------------
# Standalone RandomOrLearnedSinusoidalPosEmb kernel (lane-dense output)
# ---------------------------------------------------------------------------
def _posemb_kernel(x_ref, a_ref, p_ref, q_ref, o_ref):
    # x_ref: (B,1)  a/p/q_ref: (1, padded)  o_ref: (B, padded)
    # out = sin(x*A + P) + x*Q :  col 0 = x,  cols 1..H = sin(2*pi*x*w),
    # cols H+1..2H = cos(2*pi*x*w),  remaining pad lanes = 0.
    # One EUP sin + one VPU FMA, no lane concatenation, one full-width store.
    x = x_ref[...]
    o_ref[...] = jnp.sin(x * a_ref[...] + p_ref[...]) + x * q_ref[...]


def random_or_learned_sinusoidal_pos_emb(x, weights):
    """RandomOrLearnedSinusoidalPosEmb forward, lane-dense output.

    Returns (B, padded) float32 whose first 1 + 2*half_dim lanes are
    [x, sin(2*pi*x*w), cos(2*pi*x*w)]; remaining lanes are zeros so the store
    (and downstream loads) stay lane-dense.  Slice [:, :1+2*half_dim] only if
    the exact PyTorch shape is required.
    """
    assert x.ndim == 1 and weights.ndim == 1
    b = x.shape[0]
    half = weights.shape[0]
    out_dim = 1 + 2 * half
    padded = pl.cdiv(out_dim, _LANES) * _LANES

    w = weights.astype(jnp.float32)
    pad = jnp.zeros((padded - out_dim,), jnp.float32)
    a_row = jnp.concatenate(
        [jnp.zeros((1,), jnp.float32), w * _TWO_PI, w * _TWO_PI, pad]).reshape(1, padded)
    p_row = jnp.concatenate(
        [jnp.zeros((1 + half,), jnp.float32),
         jnp.full((half,), _HALF_PI, jnp.float32), pad]).reshape(1, padded)
    q_row = jnp.concatenate(
        [jnp.ones((1,), jnp.float32),
         jnp.zeros((padded - 1,), jnp.float32)]).reshape(1, padded)
    x2d = x.reshape(b, 1).astype(jnp.float32)

    return pl.pallas_call(
        _posemb_kernel,
        out_shape=jax.ShapeDtypeStruct((b, padded), jnp.float32),
        in_specs=[
            pl.BlockSpec((b, 1), lambda: (0, 0)),
            pl.BlockSpec((1, padded), lambda: (0, 0)),
            pl.BlockSpec((1, padded), lambda: (0, 0)),
            pl.BlockSpec((1, padded), lambda: (0, 0)),
        ],
        out_specs=pl.BlockSpec((b, padded), lambda: (0, 0)),
    )(x2d, a_row, p_row, q_row)


# ---------------------------------------------------------------------------
# Fused Unet1D time_mlp kernel:
#   pos-emb -> Linear(fourier_dim, time_dim) -> GELU -> Linear(time_dim, time_dim)
# ---------------------------------------------------------------------------
def _make_time_mlp_kernel(gelu):
    act = _GELU[gelu]

    def kernel(x_ref, a_ref, p_ref, w1x_ref, w1sc_ref, b1_ref, w2_ref, b2_ref, o_ref):
        # x_ref: (Bb,1) f32   a/p_ref: (1,2H) f32
        # w1x_ref: (1,T) f32  w1sc_ref: (2H,T) bf16  b1_ref: (1,T) f32
        # w2_ref: (T,T) bf16  b2_ref: (1,T) f32      o_ref: (Bb,T) f32
        x = x_ref[...]
        # Single fused sin covers both sin and cos halves (phase = pi/2): EUP.
        sc = jnp.sin(x * a_ref[...] + p_ref[...])                      # (Bb, 2H) f32
        # Rank-1 x column of W1 folded into the bias on the VPU -> MXU K == 2H.
        bias1 = b1_ref[...] + x * w1x_ref[...]                         # (Bb, T)  f32
        h = jnp.dot(sc.astype(jnp.bfloat16), w1sc_ref[...],
                    preferred_element_type=jnp.float32) + bias1        # MXU bf16 -> f32
        h = act(h)                                                     # f32 elementwise
        o = jnp.dot(h.astype(jnp.bfloat16), w2_ref[...],
                    preferred_element_type=jnp.float32) + b2_ref[...]  # MXU bf16 -> f32
        o_ref[...] = o                                                 # lane-dense f32 store

    return kernel


def time_mlp(t, weights, w1, b1, w2, b2, *, block_b=None, gelu="erf"):
    """Fused Unet1D time embedding: (B,) -> (B, time_dim).

    w1: (1 + 2*half_dim, time_dim), w2: (time_dim, time_dim) — i.e. the PyTorch
    nn.Linear weights transposed.  block_b enables a parallel grid over batch
    rows (both TensorCores on v7x) when timesteps are batched.
    """
    assert t.ndim == 1 and weights.ndim == 1
    b = t.shape[0]
    half = weights.shape[0]
    fourier_dim = 1 + 2 * half
    time_dim = w1.shape[1]
    assert w1.shape == (fourier_dim, time_dim)
    assert w2.shape == (time_dim, time_dim)
    assert b1.shape == (time_dim,) and b2.shape == (time_dim,)

    x2d = t.reshape(b, 1).astype(jnp.float32)
    w = weights.astype(jnp.float32)
    # Wrapper-precomputed constants: 2*pi folded into A, cos phase into P.
    a_row = (jnp.concatenate([w, w]) * _TWO_PI).reshape(1, 2 * half)
    p_row = jnp.concatenate(
        [jnp.zeros((half,), jnp.float32),
         jnp.full((half,), _HALF_PI, jnp.float32)]).reshape(1, 2 * half)
    w1_f32 = w1.astype(jnp.float32)
    w1_x = w1_f32[0:1, :]                               # (1,T) f32: rank-1 x term (VPU)
    w1_sc = w1_f32[1:, :].astype(jnp.bfloat16)          # (2H,T) bf16 MXU operand
    w2_bf = w2.astype(jnp.bfloat16)                     # (T,T)  bf16 MXU operand
    b1_2d = b1.reshape(1, time_dim).astype(jnp.float32)
    b2_2d = b2.reshape(1, time_dim).astype(jnp.float32)

    if block_b is None or block_b > b:
        block_b = b
    assert b % block_b == 0
    grid = (b // block_b,)

    row_map = lambda i: (i, 0)
    rep_map = lambda i: (0, 0)

    return pl.pallas_call(
        _make_time_mlp_kernel(gelu),
        out_shape=jax.ShapeDtypeStruct((b, time_dim), jnp.float32),
        grid=grid,
        in_specs=[
            pl.BlockSpec((block_b, 1), row_map),
            pl.BlockSpec((1, 2 * half), rep_map),
            pl.BlockSpec((1, 2 * half), rep_map),
            pl.BlockSpec((1, time_dim), rep_map),
            pl.BlockSpec((2 * half, time_dim), rep_map),
            pl.BlockSpec((1, time_dim), rep_map),
            pl.BlockSpec((time_dim, time_dim), rep_map),
            pl.BlockSpec((1, time_dim), rep_map),
        ],
        out_specs=pl.BlockSpec((block_b, time_dim), row_map),
        compiler_params=pltpu.CompilerParams(dimension_semantics=("parallel",)),
    )(x2d, a_row, p_row, w1_x, w1_sc, b1_2d, w2_bf, b2_2d)


# ---------------------------------------------------------------------------
# Pure-JAX references
# ---------------------------------------------------------------------------
def _posemb_ref(x, weights):
    x2 = x[:, None].astype(jnp.float32)
    freqs = x2 * weights[None, :].astype(jnp.float32) * _TWO_PI
    return jnp.concatenate([x2, jnp.sin(freqs), jnp.cos(freqs)], axis=-1)


def _time_mlp_ref_f32(x, weights, w1, b1, w2, b2):
    # PyTorch-semantics reference: f32 everywhere, exact erf GELU.
    f = _posemb_ref(x, weights)
    h = _gelu_erf(f @ w1 + b1[None, :])
    return h @ w2 + b2[None, :]


def _time_mlp_ref_matched(x, weights, w1, b1, w2, b2, gelu):
    # Same numeric path as the kernel (single-sin fourier, bf16 MXU operands,
    # f32 accumulation/elementwise) — used for the tight correctness check.
    w = weights.astype(jnp.float32)
    a = jnp.concatenate([w, w]) * _TWO_PI
    p = jnp.concatenate([jnp.zeros((w.shape[0],), jnp.float32),
                         jnp.full((w.shape[0],), _HALF_PI, jnp.float32)])
    sc = jnp.sin(x[:, None] * a[None, :] + p[None, :])
    bias1 = b1[None, :] + x[:, None] * w1[0:1, :].astype(jnp.float32)
    h = jnp.dot(sc.astype(jnp.bfloat16), w1[1:, :].astype(jnp.bfloat16),
                preferred_element_type=jnp.float32) + bias1
    h = _GELU[gelu](h)
    return jnp.dot(h.astype(jnp.bfloat16), w2.astype(jnp.bfloat16),
                   preferred_element_type=jnp.float32) + b2[None, :]


if __name__ == "__main__":
    # Shapes consistent with Unet1D(dim=32, learned_sinusoidal_cond=True,
    # learned_sinusoidal_dim=16): half_dim=8, fourier_dim=17, time_dim=dim*4=128.
    unet_dim = 32
    learned_sinusoidal_dim = 16
    half_dim = learned_sinusoidal_dim // 2
    fourier_dim = learned_sinusoidal_dim + 1
    time_dim = unet_dim * 4
    batch = 8

    key = jax.random.PRNGKey(0)
    kx, kw, k1, kb1, k2, kb2, kx2 = jax.random.split(key, 7)
    t = jax.random.uniform(kx, (batch,), dtype=jnp.float32)   # diffusion timesteps in [0,1)
    weights = jax.random.normal(kw, (half_dim,), dtype=jnp.float32)
    w1 = jax.random.normal(k1, (fourier_dim, time_dim), jnp.float32) / math.sqrt(fourier_dim)
    b1 = jax.random.normal(kb1, (time_dim,), jnp.float32) * 0.02
    w2 = jax.random.normal(k2, (time_dim, time_dim), jnp.float32) / math.sqrt(time_dim)
    b2 = jax.random.normal(kb2, (time_dim,), jnp.float32) * 0.02

    # 1) standalone RandomOrLearnedSinusoidalPosEmb kernel (lane-dense output).
    emb = jax.block_until_ready(random_or_learned_sinusoidal_pos_emb(t, weights))
    emb_ref = _posemb_ref(t, weights)
    assert emb.shape == (batch, _LANES), emb.shape
    assert jnp.allclose(emb[:, :fourier_dim], emb_ref, atol=1e-5, rtol=1e-5), float(
        jnp.max(jnp.abs(emb[:, :fourier_dim] - emb_ref)))
    assert bool(jnp.all(emb[:, fourier_dim:] == 0.0))

    # 2) fused time_mlp kernel (pos-emb -> Linear -> GELU -> Linear).
    gelu_used = "erf"
    try:
        out = jax.block_until_ready(time_mlp(t, weights, w1, b1, w2, b2, gelu="erf"))
    except Exception:
        # TODO(synk): exact-erf GELU did not lower on this backend; tanh fallback (~3e-4 deviation from nn.GELU()).
        gelu_used = "tanh"
        out = jax.block_until_ready(time_mlp(t, weights, w1, b1, w2, b2, gelu="tanh"))
    assert out.shape == (batch, time_dim), out.shape

    # Tight check against a reference using the identical numeric path.
    out_matched = _time_mlp_ref_matched(t, weights, w1, b1, w2, b2, gelu_used)
    assert jnp.allclose(out, out_matched, atol=1e-3, rtol=1e-3), float(
        jnp.max(jnp.abs(out - out_matched)))

    # Looser check against the pure-f32 PyTorch-semantics reference; the gap
    # documents the expected bf16-MXU delta (empirically < ~1e-2 at these shapes).
    out_f32 = _time_mlp_ref_f32(t, weights, w1, b1, w2, b2)
    assert jnp.allclose(out, out_f32, atol=2e-2, rtol=2e-2), float(
        jnp.max(jnp.abs(out - out_f32)))

    # 3) batched timesteps with a parallel grid over rows (v7x: both TCs).
    t_big = jax.random.uniform(kx2, (128,), dtype=jnp.float32)
    out_big = jax.block_until_ready(
        time_mlp(t_big, weights, w1, b1, w2, b2, block_b=64, gelu=gelu_used))
    ref_big = _time_mlp_ref_f32(t_big, weights, w1, b1, w2, b2)
    assert out_big.shape == (128, time_dim), out_big.shape
    assert jnp.allclose(out_big, ref_big, atol=2e-2, rtol=2e-2), float(
        jnp.max(jnp.abs(out_big - ref_big)))

    print("KERNEL_OK")
</pallas_src>

<mosaic_0001>
module attributes {stable_mosaic.version = 11 : i64} {
  func.func @_posemb_kernel(%arg0: memref<8x1xf32, #tpu.memory_space<vmem>>, %arg1: memref<1x128xf32, #tpu.memory_space<vmem>>, %arg2: memref<1x128xf32, #tpu.memory_space<vmem>>, %arg3: memref<1x128xf32, #tpu.memory_space<vmem>>, %arg4: memref<8x128xf32, #tpu.memory_space<vmem>>) attributes {dimension_semantics = [], scalar_prefetch = 0 : i64, scratch_operands = 0 : i64, tpu.core_type = #tpu.core_type<tc>} {
    %c0 = arith.constant 0 : index
    %c0_0 = arith.constant 0 : index
    %0 = vector.load %arg0[%c0, %c0_0] : memref<8x1xf32, #tpu.memory_space<vmem>>, vector<8x1xf32>
    %c0_1 = arith.constant 0 : index
    %c0_2 = arith.constant 0 : index
    %1 = vector.load %arg1[%c0_1, %c0_2] : memref<1x128xf32, #tpu.memory_space<vmem>>, vector<1x128xf32>
    %2 = vector.broadcast %0 : vector<8x1xf32> to vector<8x128xf32>
    %3 = vector.broadcast %1 : vector<1x128xf32> to vector<8x128xf32>
    %4 = arith.mulf %2, %3 : vector<8x128xf32>
    %c0_3 = arith.constant 0 : index
    %c0_4 = arith.constant 0 : index
    %5 = vector.load %arg2[%c0_3, %c0_4] : memref<1x128xf32, #tpu.memory_space<vmem>>, vector<1x128xf32>
    %6 = vector.broadcast %5 : vector<1x128xf32> to vector<8x128xf32>
    %7 = arith.addf %4, %6 : vector<8x128xf32>
    %8 = math.sin %7 : vector<8x128xf32>
    %c0_5 = arith.constant 0 : index
    %c0_6 = arith.constant 0 : index
    %9 = vector.load %arg3[%c0_5, %c0_6] : memref<1x128xf32, #tpu.memory_space<vmem>>, vector<1x128xf32>
    %10 = vector.broadcast %0 : vector<8x1xf32> to vector<8x128xf32>
    %11 = vector.broadcast %9 : vector<1x128xf32> to vector<8x128xf32>
    %12 = arith.mulf %10, %11 : vector<8x128xf32>
    %13 = arith.addf %8, %12 : vector<8x128xf32>
    %c0_7 = arith.constant 0 : index
    %c0_8 = arith.constant 0 : index
    %14 = vector.load %arg4[%c0_7, %c0_8] : memref<8x128xf32, #tpu.memory_space<vmem>>, vector<8x128xf32>
    tpu.vector_store %arg4[%c0_7, %c0_8], %13 {strides = array<i32>} : memref<8x128xf32, #tpu.memory_space<vmem>>, vector<8x128xf32>,
    return
  }
}

</mosaic_0001>

<bundles_post_ra>
// kernel: tpu_custom_call.1
= control target key start
LH: loop header
LB: loop body
LE: loop exit
PB: predicated region body
PF: predicated region fallthrough
CT: control target
= control target key end

     0   :  { %v214_v1 = vmov 0   ;;  %s287_s0 = inlined_call_operand.vmem [shape: f32[8,1], index: 0, kind: input, shape index: {}]   ;;  %s288_s1 = inlined_call_operand.vmem [shape: f32[1,128], index: 1, kind: input, shape index: {}]   ;;  %s289_s2 = inlined_call_operand.vmem [shape: f32[1,128], index: 2, kind: input, shape index: {}]   ;;  %s290_s3 = inlined_call_operand.vmem [shape: f32[1,128], index: 3, kind: input, shape index: {}]   ;;  %s291_s4 = inlined_call_operand.hbm [shape: f32[8,128], index: 4, kind: output, shape index: {}]  }
   0x1   :  { %v18_v0 = vld [vmem:[%s287_s0] sm:$0xff]  ;;  %187 = vset.pattern.permute.xlu0 %v214_v1 }
   0x2   :  { %22 = vperm.xlu0 %187, %v18_v0  }
   0x3   :  { %9 = vsyncpa [#allocation3], 0  ;;  %v168_v2 = vld [vmem:[%s288_s1] ss:$0 sm:$0xff]  ;;  %v215_v18 = vmov 2102212464  }
   0x4   :  { %v169_v3 = vld [vmem:[%s289_s2] ss:$0 sm:$0xff]  ;;  %v216_v20 = vmov 920167782   ;;  %v217_v24 = vmov 1326507024  }
   0x5   :  { %v218_v26 = vmov 683565275   ;;  %v219_v28 = vmov 2475754826   ;;  %v220_v31 = vmov 2131351028  }
   0x6   :  { %s221_s2 = smov [#allocation2]  }
   0x7   :  { %s160_s21 = sshll.u32 %s221_s2, 4  ;;  %s161_s21 = int_to_ptr.vmem [resolvable:$true] %s160_s21 }
   0x8   :  { %s192_s22 = scalar_lea.vmem %s161_s21, 128  ;;  %p197_p1 = scmp.lt.s32.totalorder %s161_s21, %s161_s21 }
   0x9   :  { %p193_p0 = scmp.ne.s32.totalorder %s161_s21, %s192_s22  ;;  %p198_p2 = scmp.lt.s32.totalorder %s192_s22, %s192_s22 }
   0xb   :  { %p199_p3 = por %p198_p2, %p197_p1 }
   0xd   :  { %p200_p4 = pnand %p199_p3, %p193_p0 }
  0x7d   :  { %v256_v4 = vpop.permute.xlu0 %22 }
  0x7e   :  { %v31_v5 = vmul.f32 %v168_v2, %v256_v4 }
  0x80   :  { %v259_v6 = vadd.f32 %v169_v3, %v31_v5 }
  0x82   :  { %v43_v7 = vand.u32 2139095040, %v259_v6  ;;  %v40_v8 = vand.u32 2147483647, %v259_v6  ;;  %vm42_vm7 = vcmp.lt.s32.totalorder %v259_v6, 0  ;;  %vm132_vm12 = vweird.f32 %v259_v6 }
  0x84   :  { %v44_v9 = vshrl.u32 %v43_v7, 23  ;;  %v47_v11 = vand.u32 8388607, %v40_v8  ;;  %vm41_vm8 = vcmp.le.f32.partialorder %v40_v8, 0.7853982 }
  0x86   :  { %v170_v10 = vadd.s32 4294967169, %v44_v9  ;;  %v48_v14 = vor.u32 8388608, %v47_v11 }
  0x88   :  { %v50_v12 = vadd.s32 1, %v170_v10  ;;  %v88_v22 = vshll.u32 %v48_v14, 8 }
  0x8a   :  { %vm51_vm0 = vcmp.gt.s32.totalorder %v50_v12, 0 }
  0x8b   :  { %v52_v13 = vsel %vm51_vm0, %v50_v12, 0 }
  0x8c   :  { %v54_v15 = vand.u32 31, %v52_v13  ;;  %v53_v16 = vshrl.u32 %v52_v13, 5 }
  0x8e   :  { %v55_v17 = vsub.s32 32, %v54_v15  ;;  %v66_v19 = vshll.u32 %v215_v18, %v54_v15  ;;  %v69_v21 = vshll.u32 %v216_v20, %v54_v15  ;;  %v57_v27 = vshll.u32 %v218_v26, %v54_v15 }
  0x8f   :  { %v60_v30 = vshll.u32 %v219_v28, %v54_v15  ;;  %v63_v33 = vshll.u32 %v220_v31, %v54_v15  ;;  %vm75_vm1 = vcmp.lt.s32.totalorder %v53_v16, 4  ;;  %vm72_vm2 = vcmp.lt.s32.totalorder %v53_v16, 1 }
  0x90   :  { %v67_v23 = vshrl.u32 %v216_v20, %v55_v17  ;;  %v70_v25 = vshrl.u32 %v217_v24, %v55_v17  ;;  %v58_v29 = vshrl.u32 %v219_v28, %v55_v17  ;;  %v61_v32 = vshrl.u32 %v220_v31, %v55_v17 }
  0x91   :  { %v64_v34 = vshrl.u32 %v215_v18, %v55_v17  ;;  %v56_v38 = vshrl.u32 %v218_v26, %v55_v17  ;;  %vm73_vm3 = vcmp.lt.s32.totalorder %v53_v16, 2  ;;  %vm74_vm4 = vcmp.lt.s32.totalorder %v53_v16, 3 }
  0x92   :  { %v68_v35 = vor.u32 %v67_v23, %v66_v19  ;;  %v71_v36 = vor.u32 %v70_v25, %v69_v21  ;;  %v59_v37 = vor.u32 %v58_v29, %v57_v27  ;;  %v62_v39 = vor.u32 %v61_v32, %v60_v30  ;;  %v174_v32 = vld [vmem:[%s290_s3] ss:$0 sm:$0xff] }
  0x93   :  { %v65_v40 = vor.u32 %v64_v34, %v63_v33 }
  0x94   :  { %v81_v41 = vsel %vm75_vm1, %v68_v35, 920167782  ;;  %v85_v42 = vsel %vm75_vm1, %v71_v36, 1326507024  ;;  %v80_v44 = vsel %vm72_vm2, %v59_v37, %v62_v39  ;;  %v76_v47 = vsel %vm72_vm2, %v56_v38, %v59_v37 }
  0x95   :  { %v77_v43 = vsel %vm75_vm1, %v65_v40, 2102212464  ;;  %v82_v45 = vsel %vm74_vm4, %v65_v40, %v81_v41  ;;  %v84_v46 = vsel %vm72_vm2, %v62_v39, %v65_v40  ;;  %v86_v50 = vsel %vm74_vm4, %v68_v35, %v85_v42 }
  0x96   :  { %v78_v48 = vsel %vm74_vm4, %v62_v39, %v77_v43  ;;  %v83_v49 = vsel %vm73_vm3, %v80_v44, %v82_v45  ;;  %v87_v51 = vsel %vm73_vm3, %v84_v46, %v86_v50  ;;  %v151_v35 = vmul.f32 %v174_v32, %v256_v4 }
  0x97   :  { %v265_v52 = vmul.u32.u64.low %v88_v22, %v83_v49  ;;  %v266_v53 = vmul.u32.u64.high %v88_v22, %v83_v49, %v265_v52  ;;  %v268_v54 = vmul.u32.u64.low %v88_v22, %v87_v51  ;;  %v269_v55 = vmul.u32.u64.high %v88_v22, %v87_v51, %v268_v54 }
  0x98   :  { %v79_v56 = vsel %vm73_vm3, %v76_v47, %v78_v48 }
  0x99   :  { %v98_v57 = vadd.s32 1, %v266_v53  ;;  %v95_v58 = vmul.u32 %v88_v22, %v79_v56  ;;  %vm97_vm5 = vc.u32 %v269_v55, %v265_v52  ;;  %v96_v9 = vadd.s32 %v265_v52, %v269_v55 }
  0x9b   :  { %v99_v59 = vsel %vm97_vm5, %v98_v57, %v266_v53 }
  0x9c   :  { %v100_v60 = vadd.s32 %v99_v59, %v95_v58 }
  0x9e   :  { %v101_v61 = vadd.s32 536870912, %v100_v60 }
  0xa0   :  { %v102_v62 = vshrl.u32 %v101_v61, 30 }
  0xa2   :  { %v103_v63 = vshll.u32 %v102_v62, 30  ;;  %v126_v22 = vsub.s32 4, %v102_v62 }
  0xa4   :  { %v104_v0 = vsub.s32 %v100_v60, %v103_v63  ;;  %v127_v25 = vsel %vm42_vm7, %v126_v22, %v102_v62 }
  0xa5   :  { %v129_v26 = vsel %vm41_vm8, 0, %v127_v25 }
  0xa6   :  { %v106_v1 = vsub.s32 0, %v104_v0  ;;  %v133_v27 = vadd.s32 3, %v129_v26 }
  0xa8   :  { %v171_v2 = vmin.u32 %v106_v1, %v104_v0  ;;  %v134_v28 = vand.u32 3, %v133_v27 }
  0xaa   :  { %v108_v3 = vclz %v171_v2  ;;  %vm139_vm9 = vcmp.eq.s32.totalorder %v134_v28, 2  ;;  %vm136_vm10 = vcmp.eq.s32.totalorder %v134_v28, 0  ;;  %vm135_vm11 = vcmp.lt.s32.totalorder %v134_v28, 2 }
  0xac   :  { %v172_v5 = vadd.s32 4294967294, %v108_v3 }
  0xae   :  { %vm173_vm6 = vcmp.lt.s32.totalorder %v172_v5, 0 }
  0xaf   :  { %v111_v7 = vsel %vm173_vm6, 0, %v172_v5 }
  0xb0   :  { %v112_v10 = vsub.s32 32, %v111_v7  ;;  %v116_v11 = vsub.s32 4294967266, %v111_v7  ;;  %v113_v12 = vshll.u32 %v104_v0, %v111_v7 }
  0xb2   :  { %v114_v13 = vshrl.u32 %v96_v9, %v112_v10  ;;  %v117_v14 = vadd.s32 127, %v116_v11 }
  0xb4   :  { %v115_v15 = vor.u32 %v114_v13, %v113_v12  ;;  %v118_v16 = vshll.u32 %v117_v14, 23 }
  0xb6   :  { %v119_v17 = vor.u32 4788187, %v118_v16  ;;  %v122_v19 = vcvt.s32.f32 %v115_v15 }
  0xb8   :  { %v120_v18 = vand.u32 2147483647, %v119_v17 }
  0xba   :  { %v123_v20 = vmul.f32 %v122_v19, %v120_v18 }
  0xbc   :  { %v124_v21 = vxor.u32 2147483648, %v123_v20 }
  0xbe   :  { %v125_v23 = vsel %vm42_vm7, %v124_v21, %v123_v20 }
  0xbf   :  { %v128_v24 = vsel %vm41_vm8, %v259_v6, %v125_v23 }
  0xc0   :  { %188 = vcosq.f32 %v128_v24 }
  0xc1   :  { %190 = vsinq.f32 %v128_v24 }
  0xcd   :  { %v189_v29 = vpop.eup %188 }
  0xce   :  { %v191_v30 = vpop.eup %190  ;;  %v140_v31 = vxor.u32 2147483648, %v189_v29 }
  0xcf   :  { %v137_v33 = vxor.u32 2147483648, %v191_v30 }
  0xd0   :  { %v141_v8 = vsel %vm139_vm9, %v140_v31, %v191_v30 }
  0xd1   :  { %v138_v34 = vsel %vm136_vm10, %v189_v29, %v137_v33 }
  0xd2   :  { %v142_v36 = vsel %vm135_vm11, %v138_v34, %v141_v8 }
  0xd3   :  { %v143_v37 = vsel %vm132_vm12, nan, %v142_v36 }
  0xd4   :  { %v152_v38 = vadd.f32 %v151_v35, %v143_v37 }
  0xd6   :  { %153 = vst [vmem:[#allocation2] sm:$0xff] %v152_v38 }
  0xd7   :  { %203 = shalt.err (!%p200_p4)
}
  0xd8   :  { %163 = dma.vmem_to_hbm [thread:$0]  %s161_s21, 128, %s291_s4, [#allocation3]  }
  0xd9   :  { %212 = dma.done.wait [#allocation3], 128  }
  0xda   :  { %213 = vsyncadd [#allocation3], 4294967168 }
  0xdb   :  { %167 = vsyncpa [#allocation3], 1 }

</bundles_post_ra>
